<compile_context>
chip_gen: v5e
topology: v5e:2x2
jax: 0.10.0
libtpu: 0.0.40
codegen_flags: <defaults>
</compile_context>

<pallas_src>
import math
import functools

import jax
import jax.numpy as jnp
from jax import lax
from jax.experimental import pallas as pl
from jax.experimental.pallas import tpu as pltpu  # noqa: F401  (kept for TPU-specific extensions)

# small config consistent with the module (embedding_dim scaled down)
EMBED = 64          # Config.embedding_dim (small)
N_HEAD = 4          # Config.n_head (small)
HEAD_DIM = EMBED // N_HEAD
BATCH = 2
SEQ = 8             # T <= Config.block_size (causal mask applied)
EPS = 1e-5          # nn.LayerNorm default eps
NEG_BIG = -1e30     # large finite masking bias (exp underflows to 0, no NaN risk)


def _layernorm(v, g, b):
    mu = jnp.mean(v, axis=-1, keepdims=True)
    var = jnp.mean(jnp.square(v - mu), axis=-1, keepdims=True)
    return (v - mu) * lax.rsqrt(var + EPS) * g + b


def transformer_block_kernel(x_ref, ln_ref, wqkv_ref, bqkv_ref, wproj_ref,
                             w1_ref, b1_ref, w2_ref, bvec_ref,
                             hmask_ref, abias_ref, o_ref,
                             *, n_batch, seq_len, n_head):
    B, T, H = n_batch, seq_len, n_head
    bf = jnp.bfloat16

    x = x_ref[...]                       # (B*T, C) float32
    C = x.shape[-1]

    ln = ln_ref[...]                     # (4, C): ln1_g, ln1_b, ln2_g, ln2_b
    bvec = bvec_ref[...]                 # (2, C): bproj, b2
    hmask = hmask_ref[...]               # (1, H, 1, C): head-ownership column mask

    # ---- ln1 + fused QKV projection (Q columns pre-scaled by 1/sqrt(D)) ----
    xn = _layernorm(x, ln[0:1, :], ln[1:2, :])
    qkv = jnp.dot(xn.astype(bf), wqkv_ref[...],
                  preferred_element_type=jnp.float32) + bqkv_ref[...]   # (B*T, 3C)
    q = qkv[:, 0 * C:1 * C]
    k = qkv[:, 1 * C:2 * C]
    v = qkv[:, 2 * C:3 * C]

    # ---- head-block-diagonal Q via broadcast*mask (no slicing / concat) ----
    # row (b, h, t) of qb keeps q[b, t] only in head h's columns, zero elsewhere,
    # so a single matmul against the un-regrouped K yields per-head scores.
    qb = (q.reshape(B, 1, T, C) * hmask).reshape(B * H * T, C)          # (B*H*T, C)

    # ---- one score matmul for all heads & batches: (B*H*T, B*T) ------------
    s = lax.dot_general(qb.astype(bf), k.astype(bf),
                        dimension_numbers=(((1,), (1,)), ((), ())),
                        preferred_element_type=jnp.float32)
    s = s + abias_ref[...]               # precomputed causal + batch-block bias

    m = jnp.max(s, axis=-1, keepdims=True)
    p = jnp.exp(s - m)
    denom = jnp.sum(p, axis=-1, keepdims=True)

    o = jnp.dot(p.astype(bf), v.astype(bf),
                preferred_element_type=jnp.float32)                     # (B*H*T, C)
    o = o * pl.reciprocal(denom, approx=True)                           # deferred softmax norm

    # ---- keep each column's owning head and sum over heads -> (B*T, C) -----
    y = jnp.sum(o.reshape(B, H, T, C) * hmask, axis=1).reshape(B * T, C)

    att = jnp.dot(y.astype(bf), wproj_ref[...],
                  preferred_element_type=jnp.float32) + bvec[0:1, :]
    x = x + att                                                          # residual 1

    # ---- ln2 + MLP (GELU tanh), elementwise math in f32 ---------------------
    xn2 = _layernorm(x, ln[2:3, :], ln[3:4, :])
    h1 = jnp.dot(xn2.astype(bf), w1_ref[...],
                 preferred_element_type=jnp.float32) + b1_ref[...]       # (B*T, 4C)
    c0 = math.sqrt(2.0 / math.pi)
    h1 = 0.5 * h1 * (1.0 + jnp.tanh(c0 * (h1 + 0.044715 * (h1 * h1 * h1))))
    h2 = jnp.dot(h1.astype(bf), w2_ref[...],
                 preferred_element_type=jnp.float32) + bvec[1:2, :]      # (B*T, C)
    o_ref[...] = (x + h2).astype(o_ref.dtype)                            # residual 2


def prepare_params(params, *, n_batch=BATCH, seq_len=SEQ, n_head=N_HEAD):
    """One-time parameter prep: bf16 weights, scale folding, packing, masks."""
    (ln1_g, ln1_b, wqkv, bqkv, wproj, bproj,
     ln2_g, ln2_b, w1, b1, w2, b2) = params
    bf = jnp.bfloat16
    C = wqkv.shape[0]
    B, T, H = n_batch, seq_len, n_head
    D = C // H

    # fold 1/sqrt(D) into the Q columns of the QKV projection (weight & bias)
    col_scale = jnp.concatenate(
        [jnp.full((1, C), 1.0 / math.sqrt(D), jnp.float32),
         jnp.ones((1, 2 * C), jnp.float32)], axis=1)
    wqkv_s = (wqkv * col_scale).astype(bf)
    bqkv_s = bqkv * col_scale

    # pack small vectors to cut input DMA count
    ln_pack = jnp.concatenate([ln1_g, ln1_b, ln2_g, ln2_b], axis=0)      # (4, C)
    bvec_pack = jnp.concatenate([bproj, b2], axis=0)                     # (2, C)

    # head-ownership column mask, shaped for direct broadcast: (1, H, 1, C)
    head_of_col = jnp.arange(C, dtype=jnp.int32) // D
    hmask = (head_of_col[None, :] == jnp.arange(H, dtype=jnp.int32)[:, None])
    hmask = hmask.astype(jnp.float32).reshape(1, H, 1, C)

    # additive attention bias (B*H*T, B*T): 0 where same batch & causal, else -1e30
    r = jnp.arange(B * H * T, dtype=jnp.int32)
    c = jnp.arange(B * T, dtype=jnp.int32)
    same_batch = (r[:, None] // (H * T)) == (c[None, :] // T)
    causal = (c[None, :] % T) <= (r[:, None] % T)
    abias = jnp.where(same_batch & causal, 0.0, NEG_BIG).astype(jnp.float32)

    return (ln_pack, wqkv_s, bqkv_s, wproj.astype(bf),
            w1.astype(bf), b1, w2.astype(bf), bvec_pack, hmask, abias)


def transformer_block(x, prepared, *, n_head=N_HEAD):
    (ln_pack, wqkv_s, bqkv_s, wproj_s, w1_s, b1, w2_s,
     bvec_pack, hmask, abias) = prepared
    B, T, C = x.shape

    # wrapper-side layout plumbing only: fold batch into sublane rows
    x2d = x.reshape(B * T, C)

    kernel = functools.partial(transformer_block_kernel,
                               n_batch=B, seq_len=T, n_head=n_head)
    out2d = pl.pallas_call(
        kernel,
        out_shape=jax.ShapeDtypeStruct((B * T, C), x.dtype),
        input_output_aliases={0: 0},     # output reuses x's HBM buffer
    )(x2d, ln_pack, wqkv_s, bqkv_s, wproj_s, w1_s, b1, w2_s,
      bvec_pack, hmask, abias)
    return out2d.reshape(B, T, C)


def transformer_block_ref(x, params):
    (ln1_g, ln1_b, wqkv, bqkv, wproj, bproj,
     ln2_g, ln2_b, w1, b1, w2, b2) = params
    C, H, D = EMBED, N_HEAD, HEAD_DIM
    B, T, _ = x.shape

    def ln(v, g, b):
        mu = jnp.mean(v, axis=-1, keepdims=True)
        var = jnp.mean((v - mu) ** 2, axis=-1, keepdims=True)
        return (v - mu) / jnp.sqrt(var + EPS) * g + b

    xn = ln(x, ln1_g, ln1_b)
    qkv = xn @ wqkv + bqkv
    q, k, v = qkv[..., :C], qkv[..., C:2 * C], qkv[..., 2 * C:]
    q = q.reshape(B, T, H, D).transpose(0, 2, 1, 3)
    k = k.reshape(B, T, H, D).transpose(0, 2, 1, 3)
    v = v.reshape(B, T, H, D).transpose(0, 2, 1, 3)
    s = (q @ k.transpose(0, 1, 3, 2)) / math.sqrt(D)
    mask = jnp.tril(jnp.ones((T, T), bool))
    s = jnp.where(mask, s, -jnp.inf)
    p = jax.nn.softmax(s, axis=-1)
    y = (p @ v).transpose(0, 2, 1, 3).reshape(B, T, C)
    x = x + (y @ wproj + bproj)
    xn2 = ln(x, ln2_g, ln2_b)
    h = xn2 @ w1 + b1
    h = 0.5 * h * (1.0 + jnp.tanh(math.sqrt(2.0 / math.pi) * (h + 0.044715 * h ** 3)))
    return x + (h @ w2 + b2)


def init_params(key):
    ks = jax.random.split(key, 8)
    C = EMBED
    scale = 0.02
    ln1_g = jnp.ones((1, C), jnp.float32)
    ln1_b = jnp.zeros((1, C), jnp.float32)
    wqkv = scale * jax.random.normal(ks[0], (C, 3 * C), jnp.float32)
    bqkv = scale * jax.random.normal(ks[1], (1, 3 * C), jnp.float32)
    wproj = scale * jax.random.normal(ks[2], (C, C), jnp.float32)
    bproj = scale * jax.random.normal(ks[3], (1, C), jnp.float32)
    ln2_g = jnp.ones((1, C), jnp.float32)
    ln2_b = jnp.zeros((1, C), jnp.float32)
    w1 = scale * jax.random.normal(ks[4], (C, 4 * C), jnp.float32)
    b1 = scale * jax.random.normal(ks[5], (1, 4 * C), jnp.float32)
    w2 = scale * jax.random.normal(ks[6], (4 * C, C), jnp.float32)
    b2 = scale * jax.random.normal(ks[7], (1, C), jnp.float32)
    return (ln1_g, ln1_b, wqkv, bqkv, wproj, bproj,
            ln2_g, ln2_b, w1, b1, w2, b2)


if __name__ == "__main__":
    key = jax.random.PRNGKey(0)
    k_x, k_p = jax.random.split(key)
    x = jax.random.normal(k_x, (BATCH, SEQ, EMBED), jnp.float32)
    params = init_params(k_p)

    # one-time weight prep (bf16 cast, scale folding, packing, mask precompute)
    prepared = prepare_params(params, n_batch=BATCH, seq_len=SEQ, n_head=N_HEAD)

    out = transformer_block(x, prepared)
    out = jax.block_until_ready(out)

    ref = transformer_block_ref(x, params)
    assert out.shape == (BATCH, SEQ, EMBED)
    assert jnp.allclose(out, ref, atol=2e-2, rtol=2e-2), "mismatch vs JAX reference"

    print("KERNEL_OK")
</pallas_src>

<mosaic_0001>
module attributes {stable_mosaic.version = 11 : i64} {
  func.func @transformer_block_kernel(%arg0: memref<16x64xf32, #tpu.memory_space<vmem>>, %arg1: memref<4x64xf32, #tpu.memory_space<vmem>>, %arg2: memref<64x192xbf16, #tpu.memory_space<vmem>>, %arg3: memref<1x192xf32, #tpu.memory_space<vmem>>, %arg4: memref<64x64xbf16, #tpu.memory_space<vmem>>, %arg5: memref<64x256xbf16, #tpu.memory_space<vmem>>, %arg6: memref<1x256xf32, #tpu.memory_space<vmem>>, %arg7: memref<256x64xbf16, #tpu.memory_space<vmem>>, %arg8: memref<2x64xf32, #tpu.memory_space<vmem>>, %arg9: memref<1x4x1x64xf32, #tpu.memory_space<vmem>>, %arg10: memref<64x16xf32, #tpu.memory_space<vmem>>, %arg11: memref<16x64xf32, #tpu.memory_space<vmem>>) attributes {dimension_semantics = [], scalar_prefetch = 0 : i64, scratch_operands = 0 : i64, tpu.core_type = #tpu.core_type<tc>} {
    %c0 = arith.constant 0 : index
    %c0_0 = arith.constant 0 : index
    %0 = vector.load %arg0[%c0, %c0_0] : memref<16x64xf32, #tpu.memory_space<vmem>>, vector<16x64xf32>
    %c0_1 = arith.constant 0 : index
    %c0_2 = arith.constant 0 : index
    %1 = vector.load %arg1[%c0_1, %c0_2] : memref<4x64xf32, #tpu.memory_space<vmem>>, vector<4x64xf32>
    %c0_3 = arith.constant 0 : index
    %c0_4 = arith.constant 0 : index
    %2 = vector.load %arg8[%c0_3, %c0_4] : memref<2x64xf32, #tpu.memory_space<vmem>>, vector<2x64xf32>
    %c0_5 = arith.constant 0 : index
    %c0_6 = arith.constant 0 : index
    %c0_7 = arith.constant 0 : index
    %c0_8 = arith.constant 0 : index
    %3 = vector.load %arg9[%c0_5, %c0_6, %c0_7, %c0_8] : memref<1x4x1x64xf32, #tpu.memory_space<vmem>>, vector<1x4x1x64xf32>
    %4 = vector.extract_strided_slice %1 {offsets = [0, 0], sizes = [1, 64], strides = [1, 1]} : vector<4x64xf32> to vector<1x64xf32>
    %5 = vector.extract_strided_slice %1 {offsets = [1, 0], sizes = [1, 64], strides = [1, 1]} : vector<4x64xf32> to vector<1x64xf32>
    %cst = arith.constant dense<0.000000e+00> : vector<16xf32>
    %6 = vector.multi_reduction <add>, %0, %cst [1] : vector<16x64xf32> to vector<16xf32>
    %7 = vector.shape_cast %6 : vector<16xf32> to vector<16x1xf32>
    %cst_9 = arith.constant 6.400000e+01 : f32
    %8 = vector.broadcast %cst_9 : f32 to vector<16x1xf32>
    %9 = arith.divf %7, %8 : vector<16x1xf32>
    %10 = vector.broadcast %9 : vector<16x1xf32> to vector<16x64xf32>
    %11 = arith.subf %0, %10 : vector<16x64xf32>
    %12 = arith.mulf %11, %11 : vector<16x64xf32>
    %cst_10 = arith.constant dense<0.000000e+00> : vector<16xf32>
    %13 = vector.multi_reduction <add>, %12, %cst_10 [1] : vector<16x64xf32> to vector<16xf32>
    %14 = vector.shape_cast %13 : vector<16xf32> to vector<16x1xf32>
    %cst_11 = arith.constant 6.400000e+01 : f32
    %15 = vector.broadcast %cst_11 : f32 to vector<16x1xf32>
    %16 = arith.divf %14, %15 : vector<16x1xf32>
    %17 = vector.broadcast %9 : vector<16x1xf32> to vector<16x64xf32>
    %18 = arith.subf %0, %17 : vector<16x64xf32>
    %cst_12 = arith.constant 9.99999974E-6 : f32
    %19 = vector.broadcast %cst_12 : f32 to vector<16x1xf32>
    %20 = arith.addf %16, %19 : vector<16x1xf32>
    %21 = math.rsqrt %20 : vector<16x1xf32>
    %22 = vector.broadcast %21 : vector<16x1xf32> to vector<16x64xf32>
    %23 = arith.mulf %18, %22 : vector<16x64xf32>
    %24 = vector.broadcast %4 : vector<1x64xf32> to vector<16x64xf32>
    %25 = arith.mulf %23, %24 : vector<16x64xf32>
    %26 = vector.broadcast %5 : vector<1x64xf32> to vector<16x64xf32>
    %27 = arith.addf %25, %26 : vector<16x64xf32>
    %28 = arith.truncf %27 : vector<16x64xf32> to vector<16x64xbf16>
    %c0_13 = arith.constant 0 : index
    %c0_14 = arith.constant 0 : index
    %29 = vector.load %arg2[%c0_13, %c0_14] : memref<64x192xbf16, #tpu.memory_space<vmem>>, vector<64x192xbf16>
    %cst_15 = arith.constant dense<0.000000e+00> : vector<16x192xf32>
    %30 = tpu.matmul %28, %29, %cst_15 {dimension_numbers = #tpu.dot_dimension_numbers<[1], [0], [0], [1], [0, 0, 1, 1], [], []>} : vector<16x64xbf16>, vector<64x192xbf16>, vector<16x192xf32> -> vector<16x192xf32>
    %c0_16 = arith.constant 0 : index
    %c0_17 = arith.constant 0 : index
    %31 = vector.load %arg3[%c0_16, %c0_17] : memref<1x192xf32, #tpu.memory_space<vmem>>, vector<1x192xf32>
    %32 = vector.broadcast %31 : vector<1x192xf32> to vector<16x192xf32>
    %33 = arith.addf %30, %32 : vector<16x192xf32>
    %34 = vector.extract_strided_slice %33 {offsets = [0, 0], sizes = [16, 64], strides = [1, 1]} : vector<16x192xf32> to vector<16x64xf32>
    %35 = vector.extract_strided_slice %33 {offsets = [0, 64], sizes = [16, 64], strides = [1, 1]} : vector<16x192xf32> to vector<16x64xf32>
    %36 = vector.extract_strided_slice %33 {offsets = [0, 128], sizes = [16, 64], strides = [1, 1]} : vector<16x192xf32> to vector<16x64xf32>
    %37 = vector.shape_cast %34 : vector<16x64xf32> to vector<2x1x8x64xf32>
    %38 = vector.broadcast %37 : vector<2x1x8x64xf32> to vector<2x4x8x64xf32>
    %39 = vector.broadcast %3 : vector<1x4x1x64xf32> to vector<2x4x8x64xf32>
    %40 = arith.mulf %38, %39 : vector<2x4x8x64xf32>
    %41 = vector.shape_cast %40 : vector<2x4x8x64xf32> to vector<64x64xf32>
    %42 = arith.truncf %41 : vector<64x64xf32> to vector<64x64xbf16>
    %43 = arith.truncf %35 : vector<16x64xf32> to vector<16x64xbf16>
    %cst_18 = arith.constant dense<0.000000e+00> : vector<64x16xf32>
    %44 = tpu.matmul %42, %43, %cst_18 {dimension_numbers = #tpu.dot_dimension_numbers<[1], [1], [0], [0], [0, 0, 1, 0], [], []>} : vector<64x64xbf16>, vector<16x64xbf16>, vector<64x16xf32> -> vector<64x16xf32>
    %c0_19 = arith.constant 0 : index
    %c0_20 = arith.constant 0 : index
    %45 = vector.load %arg10[%c0_19, %c0_20] : memref<64x16xf32, #tpu.memory_space<vmem>>, vector<64x16xf32>
    %46 = arith.addf %44, %45 : vector<64x16xf32>
    %cst_21 = arith.constant dense<0xFF800000> : vector<64xf32>
    %47 = vector.multi_reduction <maximumf>, %46, %cst_21 [1] : vector<64x16xf32> to vector<64xf32>
    %48 = vector.shape_cast %47 : vector<64xf32> to vector<64x1xf32>
    %49 = vector.broadcast %48 : vector<64x1xf32> to vector<64x16xf32>
    %50 = arith.subf %46, %49 : vector<64x16xf32>
    %51 = math.exp %50 : vector<64x16xf32>
    %cst_22 = arith.constant dense<0.000000e+00> : vector<64xf32>
    %52 = vector.multi_reduction <add>, %51, %cst_22 [1] : vector<64x16xf32> to vector<64xf32>
    %53 = vector.shape_cast %52 : vector<64xf32> to vector<64x1xf32>
    %54 = arith.truncf %51 : vector<64x16xf32> to vector<64x16xbf16>
    %55 = arith.truncf %36 : vector<16x64xf32> to vector<16x64xbf16>
    %cst_23 = arith.constant dense<0.000000e+00> : vector<64x64xf32>
    %56 = tpu.matmul %54, %55, %cst_23 {dimension_numbers = #tpu.dot_dimension_numbers<[1], [0], [0], [1], [0, 0, 1, 1], [], []>} : vector<64x16xbf16>, vector<16x64xbf16>, vector<64x64xf32> -> vector<64x64xf32>
    %57 = tpu.reciprocal %53 {approx = true} : vector<64x1xf32> -> vector<64x1xf32>
    %58 = vector.broadcast %57 : vector<64x1xf32> to vector<64x64xf32>
    %59 = arith.mulf %56, %58 : vector<64x64xf32>
    %60 = vector.shape_cast %59 : vector<64x64xf32> to vector<2x4x8x64xf32>
    %61 = vector.broadcast %3 : vector<1x4x1x64xf32> to vector<2x4x8x64xf32>
    %62 = arith.mulf %60, %61 : vector<2x4x8x64xf32>
    %cst_24 = arith.constant dense<0.000000e+00> : vector<2x8x64xf32>
    %63 = vector.multi_reduction <add>, %62, %cst_24 [1] : vector<2x4x8x64xf32> to vector<2x8x64xf32>
    %64 = vector.shape_cast %63 : vector<2x8x64xf32> to vector<16x64xf32>
    %65 = arith.truncf %64 : vector<16x64xf32> to vector<16x64xbf16>
    %c0_25 = arith.constant 0 : index
    %c0_26 = arith.constant 0 : index
    %66 = vector.load %arg4[%c0_25, %c0_26] : memref<64x64xbf16, #tpu.memory_space<vmem>>, vector<64x64xbf16>
    %cst_27 = arith.constant dense<0.000000e+00> : vector<16x64xf32>
    %67 = tpu.matmul %65, %66, %cst_27 {dimension_numbers = #tpu.dot_dimension_numbers<[1], [0], [0], [1], [0, 0, 1, 1], [], []>} : vector<16x64xbf16>, vector<64x64xbf16>, vector<16x64xf32> -> vector<16x64xf32>
    %68 = vector.extract_strided_slice %2 {offsets = [0, 0], sizes = [1, 64], strides = [1, 1]} : vector<2x64xf32> to vector<1x64xf32>
    %69 = vector.broadcast %68 : vector<1x64xf32> to vector<16x64xf32>
    %70 = arith.addf %67, %69 : vector<16x64xf32>
    %71 = arith.addf %0, %70 : vector<16x64xf32>
    %72 = vector.extract_strided_slice %1 {offsets = [2, 0], sizes = [1, 64], strides = [1, 1]} : vector<4x64xf32> to vector<1x64xf32>
    %73 = vector.extract_strided_slice %1 {offsets = [3, 0], sizes = [1, 64], strides = [1, 1]} : vector<4x64xf32> to vector<1x64xf32>
    %cst_28 = arith.constant dense<0.000000e+00> : vector<16xf32>
    %74 = vector.multi_reduction <add>, %71, %cst_28 [1] : vector<16x64xf32> to vector<16xf32>
    %75 = vector.shape_cast %74 : vector<16xf32> to vector<16x1xf32>
    %cst_29 = arith.constant 6.400000e+01 : f32
    %76 = vector.broadcast %cst_29 : f32 to vector<16x1xf32>
    %77 = arith.divf %75, %76 : vector<16x1xf32>
    %78 = vector.broadcast %77 : vector<16x1xf32> to vector<16x64xf32>
    %79 = arith.subf %71, %78 : vector<16x64xf32>
    %80 = arith.mulf %79, %79 : vector<16x64xf32>
    %cst_30 = arith.constant dense<0.000000e+00> : vector<16xf32>
    %81 = vector.multi_reduction <add>, %80, %cst_30 [1] : vector<16x64xf32> to vector<16xf32>
    %82 = vector.shape_cast %81 : vector<16xf32> to vector<16x1xf32>
    %cst_31 = arith.constant 6.400000e+01 : f32
    %83 = vector.broadcast %cst_31 : f32 to vector<16x1xf32>
    %84 = arith.divf %82, %83 : vector<16x1xf32>
    %85 = vector.broadcast %77 : vector<16x1xf32> to vector<16x64xf32>
    %86 = arith.subf %71, %85 : vector<16x64xf32>
    %cst_32 = arith.constant 9.99999974E-6 : f32
    %87 = vector.broadcast %cst_32 : f32 to vector<16x1xf32>
    %88 = arith.addf %84, %87 : vector<16x1xf32>
    %89 = math.rsqrt %88 : vector<16x1xf32>
    %90 = vector.broadcast %89 : vector<16x1xf32> to vector<16x64xf32>
    %91 = arith.mulf %86, %90 : vector<16x64xf32>
    %92 = vector.broadcast %72 : vector<1x64xf32> to vector<16x64xf32>
    %93 = arith.mulf %91, %92 : vector<16x64xf32>
    %94 = vector.broadcast %73 : vector<1x64xf32> to vector<16x64xf32>
    %95 = arith.addf %93, %94 : vector<16x64xf32>
    %96 = arith.truncf %95 : vector<16x64xf32> to vector<16x64xbf16>
    %c0_33 = arith.constant 0 : index
    %c0_34 = arith.constant 0 : index
    %97 = vector.load %arg5[%c0_33, %c0_34] : memref<64x256xbf16, #tpu.memory_space<vmem>>, vector<64x256xbf16>
    %cst_35 = arith.constant dense<0.000000e+00> : vector<16x256xf32>
    %98 = tpu.matmul %96, %97, %cst_35 {dimension_numbers = #tpu.dot_dimension_numbers<[1], [0], [0], [1], [0, 0, 1, 1], [], []>} : vector<16x64xbf16>, vector<64x256xbf16>, vector<16x256xf32> -> vector<16x256xf32>
    %c0_36 = arith.constant 0 : index
    %c0_37 = arith.constant 0 : index
    %99 = vector.load %arg6[%c0_36, %c0_37] : memref<1x256xf32, #tpu.memory_space<vmem>>, vector<1x256xf32>
    %100 = vector.broadcast %99 : vector<1x256xf32> to vector<16x256xf32>
    %101 = arith.addf %98, %100 : vector<16x256xf32>
    %cst_38 = arith.constant 5.000000e-01 : f32
    %102 = vector.broadcast %cst_38 : f32 to vector<16x256xf32>
    %103 = arith.mulf %102, %101 : vector<16x256xf32>
    %104 = arith.mulf %101, %101 : vector<16x256xf32>
    %105 = arith.mulf %104, %101 : vector<16x256xf32>
    %cst_39 = arith.constant 4.471500e-02 : f32
    %106 = vector.broadcast %cst_39 : f32 to vector<16x256xf32>
    %107 = arith.mulf %106, %105 : vector<16x256xf32>
    %108 = arith.addf %101, %107 : vector<16x256xf32>
    %cst_40 = arith.constant 0.797884583 : f32
    %109 = vector.broadcast %cst_40 : f32 to vector<16x256xf32>
    %110 = arith.mulf %109, %108 : vector<16x256xf32>
    %111 = math.tanh %110 : vector<16x256xf32>
    %cst_41 = arith.constant 1.000000e+00 : f32
    %112 = vector.broadcast %cst_41 : f32 to vector<16x256xf32>
    %113 = arith.addf %112, %111 : vector<16x256xf32>
    %114 = arith.mulf %103, %113 : vector<16x256xf32>
    %115 = arith.truncf %114 : vector<16x256xf32> to vector<16x256xbf16>
    %c0_42 = arith.constant 0 : index
    %c0_43 = arith.constant 0 : index
    %116 = vector.load %arg7[%c0_42, %c0_43] : memref<256x64xbf16, #tpu.memory_space<vmem>>, vector<256x64xbf16>
    %cst_44 = arith.constant dense<0.000000e+00> : vector<16x64xf32>
    %117 = tpu.matmul %115, %116, %cst_44 {dimension_numbers = #tpu.dot_dimension_numbers<[1], [0], [0], [1], [0, 0, 1, 1], [], []>} : vector<16x256xbf16>, vector<256x64xbf16>, vector<16x64xf32> -> vector<16x64xf32>
    %118 = vector.extract_strided_slice %2 {offsets = [1, 0], sizes = [1, 64], strides = [1, 1]} : vector<2x64xf32> to vector<1x64xf32>
    %119 = vector.broadcast %118 : vector<1x64xf32> to vector<16x64xf32>
    %120 = arith.addf %117, %119 : vector<16x64xf32>
    %121 = arith.addf %71, %120 : vector<16x64xf32>
    %c0_45 = arith.constant 0 : index
    %c0_46 = arith.constant 0 : index
    %122 = vector.load %arg11[%c0_45, %c0_46] : memref<16x64xf32, #tpu.memory_space<vmem>>, vector<16x64xf32>
    tpu.vector_store %arg11[%c0_45, %c0_46], %121 {strides = array<i32>} : memref<16x64xf32, #tpu.memory_space<vmem>>, vector<16x64xf32>,
    return
  }
}

</mosaic_0001>

<bundles_post_ra>
// kernel: tpu_custom_call.1
= control target key start
LH: loop header
LB: loop body
LE: loop exit
PB: predicated region body
PF: predicated region fallthrough
CT: control target
= control target key end

     0   :  { %16 = vsyncpa [#allocation3], 0  ;;  %s1571_s0 = inlined_call_operand.hbm [shape: f32[16,64], index: 0, kind: input, shape index: {}, may-alias: {0,11}]   ;;  %s1572_s1 = inlined_call_operand.vmem [shape: f32[4,64], index: 1, kind: input, shape index: {}]   ;;  %s1573_s2 = inlined_call_operand.vmem [shape: bf16[64,192], index: 2, kind: input, shape index: {}]   ;;  %s1574_s3 = inlined_call_operand.vmem [shape: f32[1,192], index: 3, kind: input, shape index: {}]   ;;  %s1575_s4 = inlined_call_operand.vmem [shape: bf16[64,64], index: 4, kind: input, shape index: {}]   ;;  %s1576_s5 = inlined_call_operand.vmem [shape: bf16[64,256], index: 5, kind: input, shape index: {}]   ;;  %s1577_s6 = inlined_call_operand.vmem [shape: f32[1,256], index: 6, kind: input, shape index: {}]   ;;  %s1578_s7 = inlined_call_operand.vmem [shape: bf16[256,64], index: 7, kind: input, shape index: {}]   ;;  %s1579_s8 = inlined_call_operand.vmem [shape: f32[2,64], index: 8, kind: input, shape index: {}]   ;;  %s1580_s9 = inlined_call_operand.vmem [shape: f32[1,4,1,64], index: 9, kind: input, shape index: {}]   ;;  %s1581_s10 = inlined_call_operand.vmem [shape: f32[64,16], index: 10, kind: input, shape index: {}]   ;;  %s1582_s11 = inlined_call_operand.hbm [shape: f32[16,64], index: 11, kind: output, shape index: {}, may-alias: {0,11}]  }
   0x1   :  { %17 = vsyncpa [#allocation4], 0  ;;  %s22_s19 = sshll.u32 %s1571_s0, 4  ;;  %s1157_s20 = smov [#allocation2]   ;;  %s23_s19 = int_to_ptr.hbm [resolvable:$true] %s22_s19 }
   0x2   :  { %s24_s21 = sshll.u32 %s1157_s20, 4  ;;  %s1158_s22 = smov 128   ;;  %s25_s21 = int_to_ptr.vmem [resolvable:$true] %s24_s21 }
   0x3   :  { %s1159_s23 = smov 8  }
   0x4   :  { %30 = dma.hbm_to_vmem [thread:$0]  %s23_s19, 256, %s25_s21, [#allocation3], %s1158_s22, %s1158_s22, %s1159_s23  }
   0x5   :  { %1153 = dma.done.wait [#allocation3], 256  }
   0x6   :  { %1154 = vsyncadd [#allocation3], 4294967040  ;;  %vm64_vm0 = vcmask 523264   ;;  %v1229_v0 = vld [vmem:[#allocation2] sm:$0xff]  ;;  %v1233_v2 = vld [vmem:[#allocation2 + $0x8] sm:$0xff]  ;;  %v1160_v4 = vmov 64.0  }
   0x7   :  { %v65_v1 = vsel %vm64_vm0, %v1229_v0, 0.0  ;;  %v68_v3 = vsel %vm64_vm0, %v1233_v2, 0.0  ;;  %1055 = vrcp.f32 %v1160_v4  ;;  %v878_v21 = vld [vmem:[%s1573_s2 + $0x30] sm:$0xf]  ;;  %v1016_v22 = vld [vmem:[%s1573_s2 + $0x34] sm:$0xf0] }
   0x8   :  { %66 = vadd.xlane.f32.xlu0 %v65_v1  ;;  %v1015_v23 = vld [vmem:[%s1573_s2 + $0x34] sm:$0xf]  ;;  %v879_v24 = vor.u32 %v1016_v22, %v878_v21  ;;  %v880_v25 = vld [vmem:[%s1573_s2 + $0x38] sm:$0xf0]  ;;  %v870_v27 = vld [vmem:[%s1573_s2 + $0x20] sm:$0xf] }
   0x9   :  { %v883_v26 = vor.u32 %v1015_v23, %v880_v25  ;;  %v1014_v28 = vld [vmem:[%s1573_s2 + $0x24] sm:$0xf0]  ;;  %v1013_v29 = vld [vmem:[%s1573_s2 + $0x24] sm:$0xf]  ;;  %v872_v31 = vld [vmem:[%s1573_s2 + $0x28] sm:$0xf0] }
   0xa   :  { %184 = vmatpush.bf16.msra.mxu0 %v879_v24  ;;  %v871_v30 = vor.u32 %v1014_v28, %v870_v27  ;;  %v875_v32 = vor.u32 %v1013_v29, %v872_v31  ;;  %v862_v33 = vld [vmem:[%s1573_s2 + $0x10] sm:$0xf]  ;;  %v1012_v34 = vld [vmem:[%s1573_s2 + $0x14] sm:$0xf0]  ;;  %v1011_v35 = vld [vmem:[%s1573_s2 + $0x14] sm:$0xf] }
   0xb   :  { %198 = vmatpush.bf16.msra.mxu1 %v883_v26  ;;  %v863_v36 = vor.u32 %v1012_v34, %v862_v33  ;;  %v864_v37 = vld [vmem:[%s1573_s2 + $0x18] sm:$0xf0]  ;;  %v854_v39 = vld [vmem:[%s1573_s2] sm:$0xf]  ;;  %v1010_v40 = vld [vmem:[%s1573_s2 + $0x4] sm:$0xf0] }
   0xc   :  { %v867_v38 = vor.u32 %v1011_v35, %v864_v37  ;;  %v1009_v41 = vld [vmem:[%s1573_s2 + $0x4] sm:$0xf]  ;;  %v855_v43 = vor.u32 %v1010_v40, %v854_v39  ;;  %v856_v44 = vld [vmem:[%s1573_s2 + $0x8] sm:$0xf0]  ;;  %v1306_v62 = vld [vmem:[%s1572_s1] sm:$0xf] }
   0xd   :  { %v1056_v5 = vpop.eup %1055  ;;  %v859_v46 = vor.u32 %v1009_v41, %v856_v44  ;;  %s1161_s20 = smov 64   ;;  %v1320_v27 = vld [vmem:[%s1580_s9] ss:$0 sm:$0xff]  ;;  %v1325_v28 = vld [vmem:[%s1580_s9 + $0x1] ss:$0 sm:$0xff]  ;;  %vm288_vm8 = vcmask 130048  }
   0xe   :  { %v72_v6 = vmul.f32 64.0, %v1056_v5  ;;  %vm76_vm1 = vweird.f32 %v1056_v5  ;;  %185 = vmatpush.bf16.msra.mxu0 %v871_v30  ;;  %v1334_v34 = vld [vmem:[%s1580_s9 + $0x2] ss:$0 sm:$0xff]  ;;  %v1339_v35 = vld [vmem:[%s1580_s9 + $0x3] ss:$0 sm:$0xff]  ;;  %s839_s24 = sshll.u32 %s1582_s11, 4  ;;  %s840_s24 = int_to_ptr.hbm [resolvable:$true] %s839_s24 }
   0xf   :  { %199 = vmatpush.bf16.msra.mxu1 %v875_v32 }
  0x10   :  { %69 = vadd.xlane.f32.xlu0 %v68_v3  ;;  %v73_v7 = vsub.f32 1.0, %v72_v6  ;;  %v116_v3 = vperm.slane %v1306_v62, 0 }
  0x12   :  { %v74_v8 = vmul.f32 %v1056_v5, %v73_v7  ;;  %186 = vmatpush.bf16.msra.mxu0 %v863_v36 }
  0x13   :  { %200 = vmatpush.bf16.msra.mxu1 %v867_v38 }
  0x14   :  { %v75_v9 = vadd.f32 %v1056_v5, %v74_v8  ;;  %v119_v8 = vperm.slane %v1306_v62, 1 }
  0x16   :  { %v1237_v10 = vsel %vm76_vm1, %v1056_v5, %v75_v9  ;;  %187 = vmatpush.bf16.msra.mxu0 %v855_v43 }
  0x17   :  { %201 = vmatpush.bf16.msra.mxu1 %v859_v46 }
  0x7b   :  { %v67_v11 = vpop.xlane.xlu0 %66 }
  0x7c   :  { %v78_v12 = vmul.f32 %v1237_v10, %v67_v11 }
  0x7e   :  { %v1241_v13 = vsub.f32 %v1229_v0, %v78_v12 }
  0x80   :  { %v82_v14 = vmul.f32 %v1241_v13, %v1241_v13 }
  0x82   :  { %v84_v15 = vsel %vm64_vm0, %v82_v14, 0.0 }
  0x83   :  { %85 = vadd.xlane.f32.xlu1 %v84_v15  ;;  %v70_v16 = vpop.xlane.xlu0 %69 }
  0x84   :  { %v79_v17 = vmul.f32 %v1237_v10, %v70_v16  ;;  %v131_v16 = vld [vmem:[%s1574_s3] sm:$0x3] }
  0x86   :  { %v1248_v18 = vsub.f32 %v1233_v2, %v79_v17  ;;  %v133_v17 = vperm.slane %v131_v16, 0 }
  0x88   :  { %v83_v19 = vmul.f32 %v1248_v18, %v1248_v18 }
  0x8a   :  { %v87_v20 = vsel %vm64_vm0, %v83_v19, 0.0  ;;  %v134_v19 = vperm.slane %v131_v16, 1 }
  0x8b   :  { %88 = vadd.xlane.f32.xlu1 %v87_v20 }
  0xf6   :  { %v86_v42 = vpop.xlane.xlu1 %85 }
  0xf7   :  { %v90_v45 = vmul.f32 %v86_v42, %v1237_v10 }
  0xf9   :  { %v92_v47 = vadd.f32 1e-05, %v90_v45  ;;  %v233_v45 = vld [vmem:[%s1581_s10] sm:$0xff] }
  0xfb   :  { %1057 = vrsqrt.f32 %v92_v47  ;;  %vm100_vm3 = vweird.f32 %v92_v47 }
  0xfe   :  { %v89_v48 = vpop.xlane.xlu1 %88 }
  0xff   :  { %v91_v49 = vmul.f32 %v89_v48, %v1237_v10 }
 0x101   :  { %v1058_v50 = vpop.eup %1057  ;;  %v93_v51 = vadd.f32 1e-05, %v91_v49  ;;  %v234_v49 = vld [vmem:[%s1581_s10 + $0x8] sm:$0xff] }
 0x102   :  { %v95_v52 = vmul.f32 %v1058_v50, %v92_v47  ;;  %vm101_vm2 = vweird.f32 %v1058_v50 }
 0x103   :  { %1059 = vrsqrt.f32 %v93_v51  ;;  %vm102_vm4 = vmor %vm100_vm3, %vm101_vm2  ;;  %vm110_vm6 = vweird.f32 %v93_v51 }
 0x104   :  { %v96_v53 = vmul.f32 %v1058_v50, %v95_v52 }
 0x106   :  { %v97_v54 = vmul.f32 0.5, %v96_v53  ;;  %v235_v53 = vld [vmem:[%s1581_s10 + $0x10] sm:$0xff] }
 0x108   :  { %v98_v55 = vsub.f32 1.5, %v97_v54 }
 0x109   :  { %v1060_v56 = vpop.eup %1059 }
 0x10a   :  { %v99_v57 = vmul.f32 %v1058_v50, %v98_v55  ;;  %v105_v58 = vmul.f32 %v1060_v56, %v93_v51  ;;  %vm111_vm5 = vweird.f32 %v1060_v56 }
 0x10b   :  { %vm112_vm7 = vmor %vm110_vm6, %vm111_vm5 }
 0x10c   :  { %v106_v59 = vmul.f32 %v1060_v56, %v105_v58  ;;  %v103_v60 = vsel %vm102_vm4, %v1058_v50, %v99_v57  ;;  %v236_v57 = vld [vmem:[%s1581_s10 + $0x18] sm:$0xff] }
 0x10d   :  { %v114_v1 = vmul.f32 %v103_v60, %v1241_v13 }
 0x10e   :  { %v107_v61 = vmul.f32 0.5, %v106_v59 }
 0x10f   :  { %v117_v7 = vmul.f32 %v116_v3, %v114_v1 }
 0x110   :  { %v108_v63 = vsub.f32 1.5, %v107_v61  ;;  %v237_v61 = vld [vmem:[%s1581_s10 + $0x20] sm:$0xff] }
 0x111   :  { %v120_v11 = vadd.f32 %v119_v8, %v117_v7 }
 0x112   :  { %v109_v4 = vmul.f32 %v1060_v56, %v108_v63 }
 0x114   :  { %v113_v5 = vsel %vm112_vm7, %v1060_v56, %v109_v4  ;;  %v238_v4 = vld [vmem:[%s1581_s10 + $0x28] sm:$0xff] }
 0x115   :  { %v115_v6 = vmul.f32 %v113_v5, %v1248_v18 }
 0x117   :  { %v118_v9 = vmul.f32 %v116_v3, %v115_v6 }
 0x119   :  { %v121_v12 = vadd.f32 %v119_v8, %v118_v9  ;;  %v239_v8 = vld [vmem:[%s1581_s10 + $0x30] sm:$0xff] }
 0x11b   :  { %v122_v14 = vpack.c.bf16 %v121_v12, %v120_v11 }
 0x11d   :  { %884 = vmatmul.msk.bf16.vlgmr.msra.gmra.mxu0 %vm64_vm0, %v122_v14  ;;  %885 = vmatmul.msk.bf16.vlgmr.msra.gmra.mxu1 %vm64_vm0, %v122_v14  ;;  %v240_v14 = vld [vmem:[%s1581_s10 + $0x38] sm:$0xff] }
 0x19a   :  { %v189_v13 = vpop.f32.mrf.mxu0  ;;  %v203_v15 = vpop.f32.mrf.mxu1 }
 0x19b   :  { %v190_v21 = vadd.f32 %v189_v13, %v133_v17  ;;  %v204_v22 = vadd.f32 %v203_v15, %v134_v19 }
 0x19d   :  { %v220_v31 = vmul.f32 %v1320_v27, %v190_v21  ;;  %v221_v32 = vmul.f32 %v1325_v28, %v190_v21  ;;  %v222_v36 = vmul.f32 %v1334_v34, %v190_v21  ;;  %v223_v37 = vmul.f32 %v1339_v35, %v190_v21 }
 0x19f   :  { %v228_v33 = vpack.c.bf16 %v221_v32, %v220_v31  ;;  %v229_v38 = vpack.c.bf16 %v223_v37, %v222_v36 }
 0x1a2   :  { %v191_v18 = vpop.f32.mrf.mxu0  ;;  %v205_v20 = vpop.f32.mrf.mxu1 }
 0x1a3   :  { %v192_v23 = vadd.f32 %v191_v18, %v133_v17  ;;  %v206_v24 = vadd.f32 %v205_v20, %v134_v19 }
 0x1a5   :  { %v365_v25 = vpack.c.bf16 %v206_v24, %v204_v22  ;;  %v232_v26 = vpack.c.bf16 %v192_v23, %v190_v21  ;;  %v224_v39 = vmul.f32 %v1320_v27, %v192_v23  ;;  %v225_v40 = vmul.f32 %v1325_v28, %v192_v23 }
 0x1a6   :  { %v226_v42 = vmul.f32 %v1334_v34, %v192_v23  ;;  %v227_v43 = vmul.f32 %v1339_v35, %v192_v23 }
 0x1a7   :  { %385 = vmatpush.bf16.msra.mxu3 %v365_v25  ;;  %242 = vrot.lane.b32.xlu2 %v232_v26, %s1161_s20  ;;  %v230_v41 = vpack.c.bf16 %v225_v40, %v224_v39 }
 0x1a8   :  { %v231_v44 = vpack.c.bf16 %v227_v43, %v226_v42 }
 0x201   :  { %v243_v29 = vpop.permute.xlu2 %242 }
 0x202   :  { %v257_v30 = vsel %vm64_vm0, %v243_v29, 0 }
 0x203   :  { %266 = vmatpush.bf16.xpose.msra.mxu2 %v257_v30 }
 0x20a   :  { %886 = vmatmul.msk.bf16.vlgmr.msra.gmra.mxu2 %vm64_vm0, %v228_v33 }
 0x21a   :  { %887 = vmatmul.msk.bf16.gmra.mxu2 %vm64_vm0, %v229_v38 }
 0x22a   :  { %888 = vmatmul.msk.bf16.gmra.mxu2 %vm64_vm0, %v230_v41 }
 0x23a   :  { %889 = vmatmul.msk.bf16.gmra.mxu2 %vm64_vm0, %v231_v44 }
 0x28d   :  { %v268_v46 = vpop.f32.mrf.mxu2 }
 0x28e   :  { %v269_v47 = vadd.f32 %v268_v46, %v233_v45 }
 0x290   :  { %v289_v48 = vsel %vm288_vm8, %v269_v47, -inf }
 0x291   :  { %290 = vmax.xlane.f32.xlu2 %v289_v48 }
 0x295   :  { %v270_v50 = vpop.f32.mrf.mxu2 }
 0x296   :  { %v271_v51 = vadd.f32 %v270_v50, %v234_v49 }
 0x298   :  { %v292_v52 = vsel %vm288_vm8, %v271_v51, -inf }
 0x299   :  { %293 = vmax.xlane.f32.xlu0 %v292_v52 }
 0x29d   :  { %v273_v54 = vpop.f32.mrf.mxu2 }
 0x29e   :  { %v274_v55 = vadd.f32 %v273_v54, %v235_v53 }
 0x2a0   :  { %v295_v56 = vsel %vm288_vm8, %v274_v55, -inf }
 0x2a1   :  { %296 = vmax.xlane.f32.xlu1 %v295_v56 }
 0x2a5   :  { %v275_v58 = vpop.f32.mrf.mxu2 }
 0x2a6   :  { %v276_v59 = vadd.f32 %v275_v58, %v236_v57 }
 0x2a8   :  { %v298_v60 = vsel %vm288_vm8, %v276_v59, -inf }
 0x2a9   :  { %299 = vmax.xlane.f32.xlu0 %v298_v60 }
 0x2ad   :  { %v278_v63 = vpop.f32.mrf.mxu2 }
 0x2ae   :  { %v279_v1 = vadd.f32 %v278_v63, %v237_v61 }
 0x2b0   :  { %v301_v3 = vsel %vm288_vm8, %v279_v1, -inf }
 0x2b1   :  { %302 = vmax.xlane.f32.xlu1 %v301_v3 }
 0x2b5   :  { %v280_v5 = vpop.f32.mrf.mxu2 }
 0x2b6   :  { %v281_v6 = vadd.f32 %v280_v5, %v238_v4 }
 0x2b8   :  { %v304_v7 = vsel %vm288_vm8, %v281_v6, -inf }
 0x2b9   :  { %305 = vmax.xlane.f32.xlu0 %v304_v7  ;;  %v1020_v7 = vld [vmem:[%s1575_s4 + $0x18] sm:$0xff] }
 0x2ba   :  { %486 = vmatpush.bf16.msrb.mxu0 %v1020_v7 }
 0x2bd   :  { %v283_v9 = vpop.f32.mrf.mxu2 }
 0x2be   :  { %v284_v11 = vadd.f32 %v283_v9, %v239_v8  ;;  %v1019_v9 = vld [vmem:[%s1575_s4 + $0x10] sm:$0xff] }
 0x2bf   :  { %487 = vmatpush.bf16.msrb.mxu0 %v1019_v9 }
 0x2c0   :  { %v307_v12 = vsel %vm288_vm8, %v284_v11, -inf }
 0x2c1   :  { %308 = vmax.xlane.f32.xlu1 %v307_v12 }
 0x2c5   :  { %v285_v13 = vpop.f32.mrf.mxu2 }
 0x2c6   :  { %v286_v15 = vadd.f32 %v285_v13, %v240_v14  ;;  %v1018_v14 = vld [vmem:[%s1575_s4 + $0x8] sm:$0xff] }
 0x2c7   :  { %488 = vmatpush.bf16.msrb.mxu0 %v1018_v14 }
 0x2c8   :  { %v310_v16 = vsel %vm288_vm8, %v286_v15, -inf }
 0x2c9   :  { %311 = vmax.xlane.f32.xlu0 %v310_v16  ;;  %v1017_v16 = vld [vmem:[%s1575_s4] sm:$0xff] }
 0x2cb   :  { %489 = vmatpush.bf16.msrb.mxu0 %v1017_v16 }
 0x304   :  { %v291_v17 = vpop.xlane.xlu2 %290 }
 0x305   :  { %v313_v19 = vsub.f32 %v269_v47, %v291_v17 }
 0x307   :  { %v321_v18 = vmul.f32 1.442695, %v313_v19 }
 0x309   :  { %1061 = vpow2.f32 %v321_v18 }
 0x30c   :  { %v294_v20 = vpop.xlane.xlu0 %293 }
 0x30d   :  { %v314_v21 = vsub.f32 %v271_v51, %v294_v20 }
 0x30f   :  { %v1062_v22 = vpop.eup %1061  ;;  %v323_v23 = vmul.f32 1.442695, %v314_v21 }
 0x310   :  { %v337_v24 = vsel %vm288_vm8, %v1062_v22, 0.0 }
 0x311   :  { %1063 = vpow2.f32 %v323_v23  ;;  %338 = vadd.xlane.f32.xlu1 %v337_v24 }
 0x314   :  { %v297_v25 = vpop.xlane.xlu1 %296 }
 0x315   :  { %v315_v26 = vsub.f32 %v274_v55, %v297_v25 }
 0x317   :  { %v1064_v29 = vpop.eup %1063  ;;  %v325_v30 = vmul.f32 1.442695, %v315_v26 }
 0x318   :  { %v340_v31 = vsel %vm288_vm8, %v1064_v29, 0.0  ;;  %v361_v32 = vpack.c.bf16 %v1064_v29, %v1062_v22 }
 0x319   :  { %1065 = vpow2.f32 %v325_v30  ;;  %341 = vadd.xlane.f32.xlu0 %v340_v31 }
 0x31a   :  { %890 = vmatmul.msk.bf16.vlgmr.msra.gmra.mxu3 %vm288_vm8, %v361_v32 }
 0x31c   :  { %v300_v33 = vpop.xlane.xlu0 %299 }
 0x31d   :  { %v316_v36 = vsub.f32 %v276_v59, %v300_v33 }
 0x31f   :  { %v1066_v37 = vpop.eup %1065  ;;  %v327_v38 = vmul.f32 1.442695, %v316_v36 }
 0x320   :  { %v343_v39 = vsel %vm288_vm8, %v1066_v37, 0.0 }
 0x321   :  { %1067 = vpow2.f32 %v327_v38  ;;  %344 = vadd.xlane.f32.xlu0 %v343_v39 }
 0x324   :  { %v303_v40 = vpop.xlane.xlu1 %302 }
 0x325   :  { %v317_v41 = vsub.f32 %v279_v1, %v303_v40 }
 0x327   :  { %v1068_v42 = vpop.eup %1067  ;;  %v329_v43 = vmul.f32 1.442695, %v317_v41 }
 0x328   :  { %v362_v44 = vpack.c.bf16 %v1068_v42, %v1066_v37  ;;  %v346_v60 = vsel %vm288_vm8, %v1068_v42, 0.0 }
 0x329   :  { %1069 = vpow2.f32 %v329_v43 }
 0x32a   :  { %891 = vmatmul.msk.bf16.gmra.mxu3 %vm288_vm8, %v362_v44 }
 0x32c   :  { %v306_v45 = vpop.xlane.xlu0 %305 }
 0x32d   :  { %v318_v46 = vsub.f32 %v281_v6, %v306_v45 }
 0x32f   :  { %v1070_v47 = vpop.eup %1069  ;;  %v331_v48 = vmul.f32 1.442695, %v318_v46 }
 0x330   :  { %v349_v49 = vsel %vm288_vm8, %v1070_v47, 0.0 }
 0x331   :  { %1071 = vpow2.f32 %v331_v48  ;;  %350 = vadd.xlane.f32.xlu1 %v349_v49 }
 0x334   :  { %v309_v50 = vpop.xlane.xlu1 %308 }
 0x335   :  { %v319_v51 = vsub.f32 %v284_v11, %v309_v50 }
 0x337   :  { %v1072_v52 = vpop.eup %1071  ;;  %v333_v53 = vmul.f32 1.442695, %v319_v51 }
 0x338   :  { %v352_v54 = vsel %vm288_vm8, %v1072_v52, 0.0  ;;  %v363_v55 = vpack.c.bf16 %v1072_v52, %v1070_v47 }
 0x339   :  { %1073 = vpow2.f32 %v333_v53  ;;  %353 = vadd.xlane.f32.xlu2 %v352_v54 }
 0x33a   :  { %892 = vmatmul.msk.bf16.gmra.mxu3 %vm288_vm8, %v363_v55 }
 0x33c   :  { %v312_v56 = vpop.xlane.xlu0 %311 }
 0x33d   :  { %v320_v57 = vsub.f32 %v286_v15, %v312_v56 }
 0x33f   :  { %v1074_v58 = vpop.eup %1073  ;;  %v335_v59 = vmul.f32 1.442695, %v320_v57 }
 0x340   :  { %v355_v61 = vsel %vm288_vm8, %v1074_v58, 0.0 }
 0x341   :  { %1075 = vpow2.f32 %v335_v59  ;;  %347 = vadd.xlane.f32.xlu2 %v346_v60  ;;  %356 = vadd.xlane.f32.xlu1 %v355_v61 }
 0x347   :  { %v1076_v63 = vpop.eup %1075 }
 0x348   :  { %v358_v1 = vsel %vm288_vm8, %v1076_v63, 0.0  ;;  %v364_v3 = vpack.c.bf16 %v1076_v63, %v1074_v58 }
 0x349   :  { %359 = vadd.xlane.f32.xlu0 %v358_v1 }
 0x34a   :  { %893 = vmatmul.msk.bf16.gmra.mxu3 %vm288_vm8, %v364_v3 }
 0x384   :  { %v339_v8 = vpop.xlane.xlu1 %338 }
 0x385   :  { %1077 = vrcp.f32 %v339_v8 }
 0x38b   :  { %v1078_v22 = vpop.eup %1077 }
 0x38c   :  { %v342_v12 = vpop.xlane.xlu0 %341 }
 0x38d   :  { %1079 = vrcp.f32 %v342_v12 }
 0x393   :  { %v1080_v23 = vpop.eup %1079 }
 0x394   :  { %v345_v19 = vpop.xlane.xlu0 %344 }
 0x395   :  { %1081 = vrcp.f32 %v345_v19 }
 0x39b   :  { %v1082_v24 = vpop.eup %1081 }
 0x39d   :  { %v387_v4 = vpop.f32.mrf.mxu3 }
 0x39e   :  { %v415_v36 = vmul.f32 %v1078_v22, %v387_v4  ;;  %v1426_v4 = vld [vmem:[%s1579_s8] sm:$0x3]  ;;  %v1027_v22 = vld [vmem:[%s1576_s5 + $0x34] sm:$0xf] }
 0x3a0   :  { %v423_v44 = vmul.f32 %v1320_v27, %v415_v36  ;;  %v1026_v36 = vld [vmem:[%s1576_s5 + $0x24] sm:$0xf0] }
 0x3a2   :  { %v431_v52 = vsel %vm64_vm0, %v423_v44, 0.0  ;;  %v915_v44 = vld [vmem:[%s1576_s5 + $0x8] sm:$0xf0] }
 0x3a4   :  { %v351_v15 = vpop.xlane.xlu1 %350 }
 0x3a5   :  { %v389_v5 = vpop.f32.mrf.mxu3  ;;  %1083 = vrcp.f32 %v351_v15 }
 0x3a6   :  { %v416_v30 = vmul.f32 %v1080_v23, %v389_v5  ;;  %v454_v5 = vperm.slane %v1426_v4, 0  ;;  %v939_v23 = vld [vmem:[%s1576_s5 + $0x38] sm:$0xf0] }
 0x3a8   :  { %v424_v41 = vmul.f32 %v1325_v28, %v416_v30  ;;  %v1025_v30 = vld [vmem:[%s1576_s5 + $0x24] sm:$0xf] }
 0x3aa   :  { %v432_v48 = vsel %vm64_vm0, %v424_v41, 0.0 }
 0x3ab   :  { %v1084_v25 = vpop.eup %1083 }
 0x3ac   :  { %v354_v13 = vpop.xlane.xlu2 %353 }
 0x3ad   :  { %v392_v6 = vpop.f32.mrf.mxu3  ;;  %1085 = vrcp.f32 %v354_v13 }
 0x3ae   :  { %v417_v38 = vmul.f32 %v1082_v24, %v392_v6  ;;  %v937_v24 = vld [vmem:[%s1576_s5 + $0x30] sm:$0xf] }
 0x3b0   :  { %v425_v45 = vmul.f32 %v1334_v34, %v417_v38  ;;  %v1023_v38 = vld [vmem:[%s1576_s5 + $0x14] sm:$0xf] }
 0x3b3   :  { %v1086_v26 = vpop.eup %1085 }
 0x3b4   :  { %v357_v18 = vpop.xlane.xlu1 %356  ;;  %v348_v20 = vpop.xlane.xlu2 %347 }
 0x3b5   :  { %v394_v11 = vpop.f32.mrf.mxu3  ;;  %1087 = vrcp.f32 %v357_v18 }
 0x3b6   :  { %1089 = vrcp.f32 %v348_v20 }
 0x3bb   :  { %v1088_v29 = vpop.eup %1087 }
 0x3bc   :  { %v360_v31 = vpop.xlane.xlu0 %359  ;;  %v1090_v33 = vpop.eup %1089 }
 0x3bd   :  { %v397_v17 = vpop.f32.mrf.mxu3  ;;  %1091 = vrcp.f32 %v360_v31  ;;  %v418_v42 = vmul.f32 %v1090_v33, %v394_v11  ;;  %v931_v31 = vld [vmem:[%s1576_s5 + $0x28] sm:$0xf0] }
 0x3be   :  { %v419_v39 = vmul.f32 %v1084_v25, %v397_v17  ;;  %v942_v25 = vor.u32 %v1027_v22, %v939_v23  ;;  %v934_v33 = vor.u32 %v1025_v30, %v931_v31  ;;  %v1040_v22 = vld [vmem:[%s1578_s7 + $0x58] sm:$0xff]  ;;  %v1030_v30 = vld [vmem:[%s1578_s7 + $0x8] sm:$0xff]  ;;  %v1037_v31 = vld [vmem:[%s1578_s7 + $0x40] sm:$0xff] }
 0x3bf   :  { %v426_v49 = vmul.f32 %v1339_v35, %v418_v42  ;;  %v1024_v42 = vld [vmem:[%s1576_s5 + $0x14] sm:$0xf0] }
 0x3c0   :  { %v427_v46 = vmul.f32 %v1320_v27, %v419_v39  ;;  %v433_v27 = vadd.f32 %v432_v48, %v431_v52  ;;  %624 = vmatpush.bf16.msra.mxu0 %v942_v25  ;;  %v923_v39 = vld [vmem:[%s1576_s5 + $0x18] sm:$0xf0]  ;;  %v1022_v48 = vld [vmem:[%s1576_s5 + $0x4] sm:$0xf0]  ;;  %v1031_v25 = vld [vmem:[%s1578_s7 + $0x10] sm:$0xff] }
 0x3c1   :  { %v926_v41 = vor.u32 %v1023_v38, %v923_v39  ;;  %v1032_v23 = vld [vmem:[%s1578_s7 + $0x18] sm:$0xff] }
 0x3c2   :  { %v438_v54 = vsel %vm64_vm0, %v427_v46, 0.0 }
 0x3c3   :  { %v1092_v51 = vpop.eup %1091 }
 0x3c4   :  { %625 = vmatpush.bf16.msra.mxu0 %v934_v33 }
 0x3c5   :  { %v399_v21 = vpop.f32.mrf.mxu3 }
 0x3c6   :  { %v420_v32 = vmul.f32 %v1086_v26, %v399_v21  ;;  %v1028_v26 = vld [vmem:[%s1576_s5 + $0x34] sm:$0xf0] }
 0x3c8   :  { %v428_v43 = vmul.f32 %v1325_v28, %v420_v32  ;;  %v434_v28 = vsel %vm64_vm0, %v425_v45, 0.0  ;;  %v929_v32 = vld [vmem:[%s1576_s5 + $0x20] sm:$0xf]  ;;  %626 = vmatpush.bf16.msra.mxu0 %v926_v41 }
 0x3c9   :  { %v435_v59 = vadd.f32 %v434_v28, %v433_v27 }
 0x3ca   :  { %v439_v50 = vsel %vm64_vm0, %v428_v43, 0.0  ;;  %v1021_v43 = vld [vmem:[%s1576_s5 + $0x4] sm:$0xf] }
 0x3cb   :  { %v440_v57 = vadd.f32 %v439_v50, %v438_v54  ;;  %v918_v50 = vor.u32 %v1021_v43, %v915_v44 }
 0x3cd   :  { %v402_v37 = vpop.f32.mrf.mxu3  ;;  %627 = vmatpush.bf16.msra.mxu0 %v918_v50 }
 0x3ce   :  { %v421_v40 = vmul.f32 %v1088_v29, %v402_v37  ;;  %v938_v29 = vor.u32 %v1028_v26, %v937_v24  ;;  %v930_v37 = vor.u32 %v1026_v36, %v929_v32  ;;  %v1039_v24 = vld [vmem:[%s1578_s7 + $0x50] sm:$0xff]  ;;  %v557_v26 = vld [vmem:[%s1577_s6] sm:$0x3]  ;;  %s1162_s6 = smov [#allocation5]  }
 0x3cf   :  { %v1029_v32 = vld [vmem:[%s1578_s7] sm:$0xff]  ;;  %v559_v33 = vperm.slane %v557_v26, 0  ;;  %v560_v36 = vperm.slane %v557_v26, 1 }
 0x3d0   :  { %v429_v47 = vmul.f32 %v1334_v34, %v421_v40  ;;  %v436_v34 = vsel %vm64_vm0, %v426_v49, 0.0  ;;  %610 = vmatpush.bf16.msrb.mxu1 %v938_v29  ;;  %v921_v40 = vld [vmem:[%s1576_s5 + $0x10] sm:$0xf]  ;;  %v1038_v29 = vld [vmem:[%s1578_s7 + $0x48] sm:$0xff] }
 0x3d1   :  { %v437_v63 = vadd.f32 %v436_v34, %v435_v59  ;;  %v922_v46 = vor.u32 %v1024_v42, %v921_v40  ;;  %v1042_v34 = vld [vmem:[%s1578_s7 + $0x68] sm:$0xff] }
 0x3d2   :  { %v441_v55 = vsel %vm64_vm0, %v429_v47, 0.0  ;;  %v913_v47 = vld [vmem:[%s1576_s5] sm:$0xf] }
 0x3d3   :  { %v442_v60 = vadd.f32 %v441_v55, %v440_v57  ;;  %v1043_v55 = vld [vmem:[%s1578_s7 + $0x70] sm:$0xff] }
 0x3d4   :  { %611 = vmatpush.bf16.msrb.mxu1 %v930_v37 }
 0x3d5   :  { %v404_v53 = vpop.f32.mrf.mxu3 }
 0x3d6   :  { %v422_v56 = vmul.f32 %v1092_v51, %v404_v53  ;;  %v914_v51 = vor.u32 %v1022_v48, %v913_v47  ;;  %v1044_v53 = vld [vmem:[%s1578_s7 + $0x78] sm:$0xff] }
 0x3d7   :  { %815 = vmatpush.bf16.msrb.mxu3 %v1044_v53 }
 0x3d8   :  { %v430_v58 = vmul.f32 %v1339_v35, %v422_v56  ;;  %612 = vmatpush.bf16.msrb.mxu1 %v922_v46 }
 0x3da   :  { %v443_v61 = vsel %vm64_vm0, %v430_v58, 0.0 }
 0x3db   :  { %v444_v1 = vadd.f32 %v443_v61, %v442_v60  ;;  %816 = vmatpush.bf16.msrb.mxu3 %v1043_v55 }
 0x3dc   :  { %613 = vmatpush.bf16.msrb.mxu1 %v914_v51 }
 0x3dd   :  { %v445_v3 = vpack.c.bf16 %v444_v1, %v437_v63 }
 0x3df   :  { %910 = vmatmul.msk.bf16.vlgmr.msrb.gmra.mxu0 %vm64_vm0, %v445_v3  ;;  %817 = vmatpush.bf16.msrb.mxu3 %v1042_v34 }
 0x45c   :  { %v491_v6 = vpop.f32.mrf.mxu0 }
 0x45d   :  { %v492_v7 = vadd.f32 %v491_v6, %v454_v5 }
 0x45f   :  { %v1430_v35 = vadd.f32 %v492_v7, %v1229_v0 }
 0x461   :  { %v498_v8 = vsel %vm64_vm0, %v1430_v35, 0.0 }
 0x462   :  { %499 = vadd.xlane.f32.xlu1 %v498_v8 }
 0x464   :  { %v493_v9 = vpop.f32.mrf.mxu0 }
 0x465   :  { %v494_v11 = vadd.f32 %v493_v9, %v454_v5  ;;  %v542_v9 = vperm.slane %v1306_v62, 2 }
 0x467   :  { %v1435_v12 = vadd.f32 %v494_v11, %v1233_v2 }
 0x469   :  { %v501_v14 = vsel %vm64_vm0, %v1435_v12, 0.0 }
 0x46a   :  { %502 = vadd.xlane.f32.xlu2 %v501_v14 }
 0x4d5   :  { %v500_v13 = vpop.xlane.xlu1 %499 }
 0x4d6   :  { %v504_v15 = vmul.f32 %v500_v13, %v1237_v10 }
 0x4d8   :  { %v1441_v16 = vsub.f32 %v1430_v35, %v504_v15 }
 0x4da   :  { %v508_v0 = vmul.f32 %v1441_v16, %v1441_v16 }
 0x4dc   :  { %v510_v17 = vsel %vm64_vm0, %v508_v0, 0.0  ;;  %v545_v0 = vperm.slane %v1306_v62, 3  ;;  %v1034_v62 = vld [vmem:[%s1578_s7 + $0x28] sm:$0xff] }
 0x4dd   :  { %v503_v19 = vpop.xlane.xlu2 %502  ;;  %511 = vadd.xlane.f32.xlu0 %v510_v17 }
 0x4de   :  { %v505_v2 = vmul.f32 %v503_v19, %v1237_v10 }
 0x4e0   :  { %v1448_v18 = vsub.f32 %v1435_v12, %v505_v2 }
 0x4e2   :  { %v509_v20 = vmul.f32 %v1448_v18, %v1448_v18 }
 0x4e4   :  { %v513_v21 = vsel %vm64_vm0, %v509_v20, 0.0 }
 0x4e5   :  { %514 = vadd.xlane.f32.xlu1 %v513_v21  ;;  %v1033_v21 = vld [vmem:[%s1578_s7 + $0x20] sm:$0xff] }
 0x550   :  { %v512_v45 = vpop.xlane.xlu0 %511 }
 0x551   :  { %v516_v49 = vmul.f32 %v512_v45, %v1237_v10 }
 0x553   :  { %v518_v52 = vadd.f32 1e-05, %v516_v49 }
 0x555   :  { %1093 = vrsqrt.f32 %v518_v52  ;;  %vm526_vm10 = vweird.f32 %v518_v52 }
 0x558   :  { %v515_v28 = vpop.xlane.xlu1 %514 }
 0x559   :  { %v517_v54 = vmul.f32 %v515_v28, %v1237_v10  ;;  %v1041_v10 = vld [vmem:[%s1578_s7 + $0x60] sm:$0xff] }
 0x55a   :  { %818 = vmatpush.bf16.msrb.mxu3 %v1041_v10 }
 0x55b   :  { %v1094_v56 = vpop.eup %1093  ;;  %v519_v27 = vadd.f32 1e-05, %v517_v54 }
 0x55c   :  { %v521_v57 = vmul.f32 %v1094_v56, %v518_v52  ;;  %vm527_vm9 = vweird.f32 %v1094_v56 }
 0x55d   :  { %1095 = vrsqrt.f32 %v519_v27  ;;  %vm528_vm11 = vmor %vm526_vm10, %vm527_vm9  ;;  %vm536_vm13 = vweird.f32 %v519_v27 }
 0x55e   :  { %v522_v58 = vmul.f32 %v1094_v56, %v521_v57  ;;  %819 = vmatpush.bf16.msrb.mxu3 %v1040_v22 }
 0x560   :  { %v523_v59 = vmul.f32 0.5, %v522_v58 }
 0x562   :  { %v524_v60 = vsub.f32 1.5, %v523_v59  ;;  %820 = vmatpush.bf16.msrb.mxu3 %v1039_v24 }
 0x563   :  { %v1096_v61 = vpop.eup %1095 }
 0x564   :  { %v525_v63 = vmul.f32 %v1094_v56, %v524_v60  ;;  %v531_v1 = vmul.f32 %v1096_v61, %v519_v27  ;;  %vm537_vm12 = vweird.f32 %v1096_v61 }
 0x565   :  { %vm538_vm14 = vmor %vm536_vm13, %vm537_vm12 }
 0x566   :  { %v532_v3 = vmul.f32 %v1096_v61, %v531_v1  ;;  %v529_v5 = vsel %vm528_vm11, %v1094_v56, %v525_v63  ;;  %821 = vmatpush.bf16.msrb.mxu3 %v1038_v29 }
 0x567   :  { %v540_v8 = vmul.f32 %v529_v5, %v1441_v16  ;;  %v1036_v16 = vld [vmem:[%s1578_s7 + $0x38] sm:$0xff] }
 0x568   :  { %v533_v6 = vmul.f32 0.5, %v532_v3  ;;  %801 = vmatpush.bf16.msra.mxu1 %v1036_v16 }
 0x569   :  { %v543_v15 = vmul.f32 %v542_v9, %v540_v8 }
 0x56a   :  { %v534_v7 = vsub.f32 1.5, %v533_v6  ;;  %822 = vmatpush.bf16.msrb.mxu3 %v1037_v31 }
 0x56b   :  { %v546_v19 = vadd.f32 %v545_v0, %v543_v15 }
 0x56c   :  { %v535_v11 = vmul.f32 %v1096_v61, %v534_v7 }
 0x56e   :  { %v539_v14 = vsel %vm538_vm14, %v1096_v61, %v535_v11 }
 0x56f   :  { %v541_v13 = vmul.f32 %v539_v14, %v1448_v18  ;;  %v1035_v18 = vld [vmem:[%s1578_s7 + $0x30] sm:$0xff]  ;;  %s837_s7 = sshll.u32 %s1162_s6, 4  ;;  %s838_s7 = int_to_ptr.vmem [resolvable:$true] %s837_s7 }
 0x570   :  { %802 = vmatpush.bf16.msra.mxu1 %v1035_v18  ;;  %v704_v18 = vperm.slane %v1426_v4, 1 }
 0x571   :  { %v544_v17 = vmul.f32 %v542_v9, %v541_v13 }
 0x573   :  { %v547_v2 = vadd.f32 %v545_v0, %v544_v17 }
 0x574   :  { %803 = vmatpush.bf16.msra.mxu1 %v1034_v62 }
 0x575   :  { %v548_v20 = vpack.c.bf16 %v547_v2, %v546_v19 }
 0x577   :  { %943 = vmatmul.msk.bf16.vlgmr.msrb.gmra.mxu1 %vm64_vm0, %v548_v20  ;;  %944 = vmatmul.msk.bf16.vlgmr.msra.gmra.mxu0 %vm64_vm0, %v548_v20 }
 0x578   :  { %804 = vmatpush.bf16.msra.mxu1 %v1033_v21 }
 0x57c   :  { %805 = vmatpush.bf16.msra.mxu1 %v1032_v23 }
 0x580   :  { %806 = vmatpush.bf16.msra.mxu1 %v1031_v25 }
 0x584   :  { %807 = vmatpush.bf16.msra.mxu1 %v1030_v30 }
 0x588   :  { %808 = vmatpush.bf16.msra.mxu1 %v1029_v32 }
 0x5f4   :  { %v615_v37 = vpop.f32.mrf.mxu1  ;;  %v629_v38 = vpop.f32.mrf.mxu0 }
 0x5f5   :  { %v616_v39 = vadd.f32 %v615_v37, %v559_v33  ;;  %v630_v40 = vadd.f32 %v629_v38, %v560_v36 }
 0x5f7   :  { %v638_v41 = vmul.f32 %v616_v39, %v616_v39  ;;  %v639_v42 = vmul.f32 %v630_v40, %v630_v40  ;;  %v634_v7 = vmul.f32 0.5, %v616_v39  ;;  %v635_v11 = vmul.f32 0.5, %v630_v40 }
 0x5f9   :  { %v642_v43 = vmul.f32 %v638_v41, %v616_v39  ;;  %v643_v44 = vmul.f32 %v639_v42, %v630_v40 }
 0x5fb   :  { %v646_v45 = vmul.f32 0.044715, %v642_v43  ;;  %v647_v46 = vmul.f32 0.044715, %v643_v44 }
 0x5fc   :  { %v617_v47 = vpop.f32.mrf.mxu1  ;;  %v631_v48 = vpop.f32.mrf.mxu0 }
 0x5fd   :  { %v650_v49 = vadd.f32 %v646_v45, %v616_v39  ;;  %v618_v50 = vadd.f32 %v617_v47, %v559_v33  ;;  %v632_v51 = vadd.f32 %v631_v48, %v560_v36  ;;  %v651_v52 = vadd.f32 %v647_v46, %v630_v40 }
 0x5ff   :  { %v640_v53 = vmul.f32 %v618_v50, %v618_v50  ;;  %v641_v28 = vmul.f32 %v632_v51, %v632_v51  ;;  %v654_v54 = vmul.f32 0.7978846, %v650_v49  ;;  %v655_v56 = vmul.f32 0.7978846, %v651_v52 }
 0x600   :  { %v636_v8 = vmul.f32 0.5, %v618_v50  ;;  %v637_v14 = vmul.f32 0.5, %v632_v51 }
 0x601   :  { %v644_v55 = vmul.f32 %v640_v53, %v618_v50  ;;  %v645_v27 = vmul.f32 %v641_v28, %v632_v51  ;;  %1097 = vtanh.f32 %v654_v54 }
 0x602   :  { %1099 = vtanh.f32 %v655_v56 }
 0x603   :  { %v648_v57 = vmul.f32 0.044715, %v644_v55  ;;  %v649_v34 = vmul.f32 0.044715, %v645_v27 }
 0x605   :  { %v652_v58 = vadd.f32 %v648_v57, %v618_v50  ;;  %v653_v59 = vadd.f32 %v649_v34, %v632_v51 }
 0x607   :  { %v656_v10 = vmul.f32 0.7978846, %v652_v58  ;;  %v657_v60 = vmul.f32 0.7978846, %v653_v59  ;;  %v1098_v61 = vpop.eup %1097 }
 0x608   :  { %v1100_v63 = vpop.eup %1099  ;;  %v662_v1 = vadd.f32 1.0, %v1098_v61 }
 0x609   :  { %1101 = vtanh.f32 %v656_v10  ;;  %v663_v5 = vadd.f32 1.0, %v1100_v63 }
 0x60a   :  { %1103 = vtanh.f32 %v657_v60  ;;  %v666_v15 = vmul.f32 %v662_v1, %v634_v7 }
 0x60b   :  { %v667_v17 = vmul.f32 %v663_v5, %v635_v11 }
 0x60f   :  { %v1102_v3 = vpop.eup %1101 }
 0x610   :  { %v1104_v6 = vpop.eup %1103  ;;  %v664_v9 = vadd.f32 1.0, %v1102_v3 }
 0x611   :  { %v665_v13 = vadd.f32 1.0, %v1104_v6 }
 0x612   :  { %v668_v0 = vmul.f32 %v664_v9, %v636_v8 }
 0x613   :  { %v669_v19 = vmul.f32 %v665_v13, %v637_v14 }
 0x614   :  { %v670_v2 = vpack.c.bf16 %v668_v0, %v666_v15 }
 0x615   :  { %v671_v20 = vpack.c.bf16 %v669_v19, %v667_v17 }
 0x616   :  { %809 = vmatmul.bf16.vlgmr.msra.gmra.mxu1 %v670_v2 }
 0x617   :  { %823 = vmatmul.bf16.vlgmr.msrb.gmra.mxu3 %v671_v20 }
 0x693   :  { %v810_v16 = vpop.f32.mrf.mxu1 }
 0x694   :  { %v811_v62 = vadd.f32 %v810_v16, %v704_v18 }
 0x69a   :  { %v824_v21 = vpop.f32.mrf.mxu3 }
 0x69b   :  { %v825_v22 = vadd.f32 %v824_v21, %v811_v62  ;;  %v812_v24 = vpop.f32.mrf.mxu1 }
 0x69c   :  { %v813_v25 = vadd.f32 %v812_v24, %v704_v18 }
 0x69d   :  { %v829_v23 = vadd.f32 %v825_v22, %v1430_v35 }
 0x69f   :  { %831 = vst.msk [vmem:[#allocation5] sm:$0xff] %vm64_vm0, %v829_v23 }
 0x6a2   :  { %v826_v26 = vpop.f32.mrf.mxu3 }
 0x6a3   :  { %v827_v29 = vadd.f32 %v826_v26, %v813_v25 }
 0x6a5   :  { %v830_v30 = vadd.f32 %v827_v29, %v1435_v12 }
 0x6a7   :  { %832 = vst.msk [vmem:[#allocation5 + $0x8] sm:$0xff] %vm64_vm0, %v830_v30 }
 0x6a8   :  { %845 = dma.vmem_to_hbm [thread:$0]  %s838_s7, 256, %s840_s24, [#allocation4], %s1158_s22, %s1158_s22, %s1159_s23  }
 0x6a9   :  { %1155 = dma.done.wait [#allocation4], 256  }
 0x6aa   :  { %1156 = vsyncadd [#allocation4], 4294967040 }
 0x6ab   :  { %850 = vsyncpa [#allocation3], 1 }
 0x6ac   :  { %851 = vsyncpa [#allocation4], 1 }

</bundles_post_ra>
